<compile_context>
chip_gen: v6e
topology: v6e:2x2x1
jax: 0.10.0
libtpu: 0.0.40
codegen_flags: <defaults>
</compile_context>

<pallas_src>
import functools

import jax
import jax.numpy as jnp
from jax.experimental import pallas as pl
from jax.experimental.pallas import tpu as pltpu

GAMMA = 8


def _static_pow(v, p):
    """Integer power via exponentiation-by-squaring (stays on the VALU)."""
    if not (isinstance(p, int) and p >= 0):
        return v ** p          # fallback for non-integer gamma
    result = None
    base = v
    while p > 0:
        if p & 1:
            result = base if result is None else result * base
        base = base * base
        p >>= 1
    return result if result is not None else jnp.ones_like(v)


def _focal_loss_kernel(x_ref, t_ref, a_ref, o_ref, *, hw, gamma,
                       alpha_is_ones, need_mask):
    """x_ref: (bt, C, K, 128) logits, t_ref: (bt, K, 128) int32 targets,
    a_ref: (C,) f32 alpha in SMEM, o_ref: (1, 128) f32 partial sums."""
    j = pl.program_id(1)
    C = x_ref.shape[1]
    K = x_ref.shape[2]

    t = t_ref[...]                                        # (bt, K, 128) int32

    # Pass 1: running per-pixel max over classes (per-class slab upcast, VPU only).
    m = x_ref[:, 0].astype(jnp.float32)                   # (bt, K, 128)
    for c in range(1, C):
        m = jnp.maximum(m, x_ref[:, c].astype(jnp.float32))

    # Pass 2: fused sum-exp + target gather (+ alpha gather). No (C,K,128)
    # iota/onehot/exp temporaries; gather is a select chain against int targets.
    s = jnp.zeros_like(m)
    x_t = jnp.zeros_like(m)
    a_t = None if alpha_is_ones else jnp.zeros_like(m)
    for c in range(C):
        xc = x_ref[:, c].astype(jnp.float32)              # (bt, K, 128)
        s = s + jnp.exp(xc - m)                           # EUP exp, VPU add
        hit = t == c
        x_t = jnp.where(hit, xc, x_t)
        if not alpha_is_ones:
            a_t = jnp.where(hit, a_ref[c], a_t)           # per-class SMEM scalar

    logpt = (x_t - m) - jnp.log(s)
    pt = jnp.exp(logpt)
    w_g = _static_pow(1.0 - pt, gamma)    # gamma=8 -> w2=w*w; w4=w2*w2; w8=w4*w4
    weighted = logpt if alpha_is_ones else logpt * a_t
    loss = -w_g * weighted                                # (bt, K, 128)

    if need_mask:
        # zero contributions from padded lanes / partial last pixel block (also
        # kills NaN/garbage read from out-of-bounds parts of a partial block)
        kk = jax.lax.broadcasted_iota(jnp.int32, loss.shape, 1)
        ll = jax.lax.broadcasted_iota(jnp.int32, loss.shape, 2)
        pix = (j * K + kk) * 128 + ll
        loss = jnp.where(pix < hw, loss, 0.0)

    # lane-dense per-tile partial sum; final scalar reduce happens in the wrapper
    o_ref[...] = jnp.sum(loss, axis=(0, 1)).reshape(1, 128)


def focal_loss(logits_nchw, target_bhw, alpha=None, gamma=GAMMA,
               reduction="mean", vmem_block_budget_bytes=12 << 20):
    """Focal loss matching the PyTorch module's forward (NCHW logits, BHW targets).

    alpha=None means alpha == ones(C) (the module default) and statically skips
    the in-kernel alpha gather, including under jit.
    """
    B, C, H, W = logits_nchw.shape
    HW = H * W
    N = B * HW

    alpha_is_ones = alpha is None
    if alpha_is_ones:
        a = jnp.ones((C,), dtype=jnp.float32)
    else:
        a = jnp.asarray(alpha, dtype=jnp.float32).reshape(C)

    # Native-order, copy-free reshapes: (B,C,H,W) -> (B,C,HW); targets -> (B,HW)
    x = logits_nchw.reshape(B, C, HW)
    t = target_bhw.reshape(B, HW).astype(jnp.int32)

    HW128 = pl.cdiv(HW, 128)          # number of 128-pixel lane groups
    HWp = HW128 * 128
    if HWp != HW:
        # TODO(synk): for large tensors with HW % 128 != 0 this pad re-writes the
        # whole tensor; a dedicated ragged-tail path would avoid the extra HBM pass.
        x = jnp.pad(x, ((0, 0), (0, 0), (0, HWp - HW)))
        t = jnp.pad(t, ((0, 0), (0, HWp - HW)))
    x = x.reshape(B, C, HW128, 128)   # pixels are (sublane, lane) dense per class
    t = t.reshape(B, HW128, 128)

    # --- tile sizing from a generation-safe VMEM budget ------------------------
    # per 128-pixel lane group per batch row: C logits + int32 target lane group
    itemsize = x.dtype.itemsize
    per_group_bytes = 128 * (C * itemsize + 4)
    g_max = max(8, (vmem_block_budget_bytes // (2 * per_group_bytes)) // 8 * 8)

    if HW128 >= g_max:
        # big images: 1 batch row per step, g_max lane groups (multiple of 8)
        k_tile, bt = g_max, 1
    else:
        # small images: whole pixel axis per step, span several batch rows so the
        # step is still big enough to amortize per-step overhead (megacore too)
        k_tile = HW128                      # equals full dim -> any value is legal
        bt_cap = max(1, g_max // max(HW128, 1))
        if B >= 2:
            bt_cap = min(bt_cap, max(1, B // 2))   # keep >= 2 grid steps
        bt = 1
        for d in range(min(B, bt_cap), 0, -1):
            if B % d == 0:                  # exact divisor -> no batch masking
                bt = d
                break

    GB = B // bt
    JT = pl.cdiv(HW128, k_tile)
    need_mask = (HWp != HW) or (HW128 % k_tile != 0)

    kernel = functools.partial(
        _focal_loss_kernel, hw=HW, gamma=gamma,
        alpha_is_ones=alpha_is_ones, need_mask=need_mask)

    partials = pl.pallas_call(
        kernel,
        out_shape=jax.ShapeDtypeStruct((GB, 1, JT * 128), jnp.float32),
        grid=(GB, JT),
        in_specs=[
            pl.BlockSpec((bt, C, k_tile, 128), lambda b, j: (b, 0, j, 0)),  # logits
            pl.BlockSpec((bt, k_tile, 128), lambda b, j: (b, j, 0)),        # targets
            pl.BlockSpec(memory_space=pltpu.MemorySpace.SMEM),              # alpha
        ],
        out_specs=pl.BlockSpec((None, 1, 128), lambda b, j: (b, 0, j)),
        compiler_params=pltpu.CompilerParams(
            dimension_semantics=("parallel", "parallel"),
            vmem_limit_bytes=32 << 20),
    )(x, t, a)

    total = jnp.sum(partials)
    if reduction is None:
        # TODO(synk): per-element loss output not emitted by the partial-sum kernel path
        raise NotImplementedError
    elif reduction == "mean":
        return total / N
    elif reduction == "sum":
        return total
    else:
        raise ValueError("FocalLoss: reduction must be 'mean', 'sum' or None")


def _reference(logits_nchw, target_bhw, alpha, gamma=GAMMA):
    B, C, H, W = logits_nchw.shape
    x = jnp.transpose(logits_nchw, (0, 2, 3, 1)).reshape(-1, C).astype(jnp.float32)
    t = target_bhw.reshape(-1).astype(jnp.int32)
    logp = jax.nn.log_softmax(x, axis=1)
    logpt = jnp.take_along_axis(logp, t[:, None], axis=1)[:, 0]
    pt = jnp.exp(logpt)
    at = alpha.astype(jnp.float32)[t]
    loss = -((1.0 - pt) ** gamma) * (logpt * at)
    return jnp.mean(loss)


if __name__ == "__main__":
    key = jax.random.PRNGKey(0)
    k1, k2 = jax.random.split(key)

    B, C, H, W = 2, 20, 16, 16          # C=20 matches default alpha=torch.ones(20)
    logits = jax.random.normal(k1, (B, C, H, W), dtype=jnp.float32)
    target = jax.random.randint(k2, (B, H, W), 0, C, dtype=jnp.int32)
    alpha_ones = jnp.ones((C,), dtype=jnp.float32)

    # default config: gamma=8, alpha=ones (alpha=None fast path), reduction='mean'
    out = jax.block_until_ready(focal_loss(logits, target))
    ref = _reference(logits, target, alpha_ones)
    assert jnp.allclose(out, ref, rtol=1e-5, atol=1e-6), (out, ref)

    # non-uniform alpha exercises the in-kernel SMEM alpha-gather path
    alpha_var = jnp.linspace(0.5, 1.5, C, dtype=jnp.float32)
    out_a = jax.block_until_ready(focal_loss(logits, target, alpha_var))
    ref_a = _reference(logits, target, alpha_var)
    assert jnp.allclose(out_a, ref_a, rtol=1e-5, atol=1e-6), (out_a, ref_a)

    # odd spatial size exercises lane padding + in-kernel masking
    H2, W2 = 9, 9
    logits2 = jax.random.normal(k1, (B, C, H2, W2), dtype=jnp.float32)
    target2 = jax.random.randint(k2, (B, H2, W2), 0, C, dtype=jnp.int32)
    out_m = jax.block_until_ready(focal_loss(logits2, target2))
    ref_m = _reference(logits2, target2, alpha_ones)
    assert jnp.allclose(out_m, ref_m, rtol=1e-5, atol=1e-6), (out_m, ref_m)

    # bf16 logits in HBM (halves DMA bytes); compute stays f32 inside the kernel
    out_b = jax.block_until_ready(
        focal_loss(logits.astype(jnp.bfloat16), target))
    ref_b = _reference(logits.astype(jnp.bfloat16), target, alpha_ones)
    assert jnp.allclose(out_b, ref_b, rtol=5e-4, atol=1e-5), (out_b, ref_b)

    # batch-spanning blocks (bt > 1) for small-HW inputs (megacore balance path)
    B4 = 4
    logits4 = jax.random.normal(k1, (B4, C, H, W), dtype=jnp.float32)
    target4 = jax.random.randint(k2, (B4, H, W), 0, C, dtype=jnp.int32)
    out_4 = jax.block_until_ready(focal_loss(logits4, target4))
    ref_4 = _reference(logits4, target4, alpha_ones)
    assert jnp.allclose(out_4, ref_4, rtol=1e-5, atol=1e-6), (out_4, ref_4)

    # tiny VMEM budget forces multi-block pixel tiling + partial-block masking
    H5, W5 = 48, 48
    logits5 = jax.random.normal(k1, (B, C, H5, W5), dtype=jnp.float32)
    target5 = jax.random.randint(k2, (B, H5, W5), 0, C, dtype=jnp.int32)
    out_5 = jax.block_until_ready(
        focal_loss(logits5, target5, vmem_block_budget_bytes=1 << 18))
    ref_5 = _reference(logits5, target5, alpha_ones)
    assert jnp.allclose(out_5, ref_5, rtol=1e-5, atol=1e-6), (out_5, ref_5)

    print("KERNEL_OK")
</pallas_src>

<mosaic_0001>
module attributes {stable_mosaic.version = 11 : i64} {
  func.func @_focal_loss_kernel(%arg0: i32, %arg1: i32, %arg2: memref<1x20x2x128xf32, #tpu.memory_space<vmem>>, %arg3: memref<1x2x128xi32, #tpu.memory_space<vmem>>, %arg4: memref<20xf32, #tpu.memory_space<smem>>, %arg5: memref<1x1x128xf32, #tpu.memory_space<vmem>>) attributes {dimension_semantics = [#tpu.dimension_semantics<parallel>, #tpu.dimension_semantics<parallel>], iteration_bounds = array<i64: 2, 1>, scalar_prefetch = 0 : i64, scratch_operands = 0 : i64, tpu.core_type = #tpu.core_type<tc>, window_params = [{transform_indices = @transform_0, window_bounds = array<i64: 1, 20, 2, 128>}, {transform_indices = @transform_1, window_bounds = array<i64: 1, 2, 128>}, {transform_indices = @transform_2, window_bounds = array<i64: 20>}, {transform_indices = @transform_3, window_bounds = array<i64: 1, 1, 128>}]} {
    %c0 = arith.constant 0 : index
    %c0_0 = arith.constant 0 : index
    %c0_1 = arith.constant 0 : index
    %0 = vector.load %arg3[%c0, %c0_0, %c0_1] : memref<1x2x128xi32, #tpu.memory_space<vmem>>, vector<1x2x128xi32>
    %c0_2 = arith.constant 0 : index
    %c0_3 = arith.constant 0 : index
    %c0_4 = arith.constant 0 : index
    %c0_5 = arith.constant 0 : index
    %1 = vector.load %arg2[%c0_2, %c0_3, %c0_4, %c0_5] : memref<1x20x2x128xf32, #tpu.memory_space<vmem>>, vector<1x1x2x128xf32>
    %2 = vector.shape_cast %1 : vector<1x1x2x128xf32> to vector<1x2x128xf32>
    %c0_6 = arith.constant 0 : index
    %c1 = arith.constant 1 : index
    %c0_7 = arith.constant 0 : index
    %c0_8 = arith.constant 0 : index
    %3 = vector.load %arg2[%c0_6, %c1, %c0_7, %c0_8] : memref<1x20x2x128xf32, #tpu.memory_space<vmem>>, vector<1x1x2x128xf32>
    %4 = vector.shape_cast %3 : vector<1x1x2x128xf32> to vector<1x2x128xf32>
    %5 = arith.maximumf %2, %4 : vector<1x2x128xf32>
    %c0_9 = arith.constant 0 : index
    %c2 = arith.constant 2 : index
    %c0_10 = arith.constant 0 : index
    %c0_11 = arith.constant 0 : index
    %6 = vector.load %arg2[%c0_9, %c2, %c0_10, %c0_11] : memref<1x20x2x128xf32, #tpu.memory_space<vmem>>, vector<1x1x2x128xf32>
    %7 = vector.shape_cast %6 : vector<1x1x2x128xf32> to vector<1x2x128xf32>
    %8 = arith.maximumf %5, %7 : vector<1x2x128xf32>
    %c0_12 = arith.constant 0 : index
    %c3 = arith.constant 3 : index
    %c0_13 = arith.constant 0 : index
    %c0_14 = arith.constant 0 : index
    %9 = vector.load %arg2[%c0_12, %c3, %c0_13, %c0_14] : memref<1x20x2x128xf32, #tpu.memory_space<vmem>>, vector<1x1x2x128xf32>
    %10 = vector.shape_cast %9 : vector<1x1x2x128xf32> to vector<1x2x128xf32>
    %11 = arith.maximumf %8, %10 : vector<1x2x128xf32>
    %c0_15 = arith.constant 0 : index
    %c4 = arith.constant 4 : index
    %c0_16 = arith.constant 0 : index
    %c0_17 = arith.constant 0 : index
    %12 = vector.load %arg2[%c0_15, %c4, %c0_16, %c0_17] : memref<1x20x2x128xf32, #tpu.memory_space<vmem>>, vector<1x1x2x128xf32>
    %13 = vector.shape_cast %12 : vector<1x1x2x128xf32> to vector<1x2x128xf32>
    %14 = arith.maximumf %11, %13 : vector<1x2x128xf32>
    %c0_18 = arith.constant 0 : index
    %c5 = arith.constant 5 : index
    %c0_19 = arith.constant 0 : index
    %c0_20 = arith.constant 0 : index
    %15 = vector.load %arg2[%c0_18, %c5, %c0_19, %c0_20] : memref<1x20x2x128xf32, #tpu.memory_space<vmem>>, vector<1x1x2x128xf32>
    %16 = vector.shape_cast %15 : vector<1x1x2x128xf32> to vector<1x2x128xf32>
    %17 = arith.maximumf %14, %16 : vector<1x2x128xf32>
    %c0_21 = arith.constant 0 : index
    %c6 = arith.constant 6 : index
    %c0_22 = arith.constant 0 : index
    %c0_23 = arith.constant 0 : index
    %18 = vector.load %arg2[%c0_21, %c6, %c0_22, %c0_23] : memref<1x20x2x128xf32, #tpu.memory_space<vmem>>, vector<1x1x2x128xf32>
    %19 = vector.shape_cast %18 : vector<1x1x2x128xf32> to vector<1x2x128xf32>
    %20 = arith.maximumf %17, %19 : vector<1x2x128xf32>
    %c0_24 = arith.constant 0 : index
    %c7 = arith.constant 7 : index
    %c0_25 = arith.constant 0 : index
    %c0_26 = arith.constant 0 : index
    %21 = vector.load %arg2[%c0_24, %c7, %c0_25, %c0_26] : memref<1x20x2x128xf32, #tpu.memory_space<vmem>>, vector<1x1x2x128xf32>
    %22 = vector.shape_cast %21 : vector<1x1x2x128xf32> to vector<1x2x128xf32>
    %23 = arith.maximumf %20, %22 : vector<1x2x128xf32>
    %c0_27 = arith.constant 0 : index
    %c8 = arith.constant 8 : index
    %c0_28 = arith.constant 0 : index
    %c0_29 = arith.constant 0 : index
    %24 = vector.load %arg2[%c0_27, %c8, %c0_28, %c0_29] : memref<1x20x2x128xf32, #tpu.memory_space<vmem>>, vector<1x1x2x128xf32>
    %25 = vector.shape_cast %24 : vector<1x1x2x128xf32> to vector<1x2x128xf32>
    %26 = arith.maximumf %23, %25 : vector<1x2x128xf32>
    %c0_30 = arith.constant 0 : index
    %c9 = arith.constant 9 : index
    %c0_31 = arith.constant 0 : index
    %c0_32 = arith.constant 0 : index
    %27 = vector.load %arg2[%c0_30, %c9, %c0_31, %c0_32] : memref<1x20x2x128xf32, #tpu.memory_space<vmem>>, vector<1x1x2x128xf32>
    %28 = vector.shape_cast %27 : vector<1x1x2x128xf32> to vector<1x2x128xf32>
    %29 = arith.maximumf %26, %28 : vector<1x2x128xf32>
    %c0_33 = arith.constant 0 : index
    %c10 = arith.constant 10 : index
    %c0_34 = arith.constant 0 : index
    %c0_35 = arith.constant 0 : index
    %30 = vector.load %arg2[%c0_33, %c10, %c0_34, %c0_35] : memref<1x20x2x128xf32, #tpu.memory_space<vmem>>, vector<1x1x2x128xf32>
    %31 = vector.shape_cast %30 : vector<1x1x2x128xf32> to vector<1x2x128xf32>
    %32 = arith.maximumf %29, %31 : vector<1x2x128xf32>
    %c0_36 = arith.constant 0 : index
    %c11 = arith.constant 11 : index
    %c0_37 = arith.constant 0 : index
    %c0_38 = arith.constant 0 : index
    %33 = vector.load %arg2[%c0_36, %c11, %c0_37, %c0_38] : memref<1x20x2x128xf32, #tpu.memory_space<vmem>>, vector<1x1x2x128xf32>
    %34 = vector.shape_cast %33 : vector<1x1x2x128xf32> to vector<1x2x128xf32>
    %35 = arith.maximumf %32, %34 : vector<1x2x128xf32>
    %c0_39 = arith.constant 0 : index
    %c12 = arith.constant 12 : index
    %c0_40 = arith.constant 0 : index
    %c0_41 = arith.constant 0 : index
    %36 = vector.load %arg2[%c0_39, %c12, %c0_40, %c0_41] : memref<1x20x2x128xf32, #tpu.memory_space<vmem>>, vector<1x1x2x128xf32>
    %37 = vector.shape_cast %36 : vector<1x1x2x128xf32> to vector<1x2x128xf32>
    %38 = arith.maximumf %35, %37 : vector<1x2x128xf32>
    %c0_42 = arith.constant 0 : index
    %c13 = arith.constant 13 : index
    %c0_43 = arith.constant 0 : index
    %c0_44 = arith.constant 0 : index
    %39 = vector.load %arg2[%c0_42, %c13, %c0_43, %c0_44] : memref<1x20x2x128xf32, #tpu.memory_space<vmem>>, vector<1x1x2x128xf32>
    %40 = vector.shape_cast %39 : vector<1x1x2x128xf32> to vector<1x2x128xf32>
    %41 = arith.maximumf %38, %40 : vector<1x2x128xf32>
    %c0_45 = arith.constant 0 : index
    %c14 = arith.constant 14 : index
    %c0_46 = arith.constant 0 : index
    %c0_47 = arith.constant 0 : index
    %42 = vector.load %arg2[%c0_45, %c14, %c0_46, %c0_47] : memref<1x20x2x128xf32, #tpu.memory_space<vmem>>, vector<1x1x2x128xf32>
    %43 = vector.shape_cast %42 : vector<1x1x2x128xf32> to vector<1x2x128xf32>
    %44 = arith.maximumf %41, %43 : vector<1x2x128xf32>
    %c0_48 = arith.constant 0 : index
    %c15 = arith.constant 15 : index
    %c0_49 = arith.constant 0 : index
    %c0_50 = arith.constant 0 : index
    %45 = vector.load %arg2[%c0_48, %c15, %c0_49, %c0_50] : memref<1x20x2x128xf32, #tpu.memory_space<vmem>>, vector<1x1x2x128xf32>
    %46 = vector.shape_cast %45 : vector<1x1x2x128xf32> to vector<1x2x128xf32>
    %47 = arith.maximumf %44, %46 : vector<1x2x128xf32>
    %c0_51 = arith.constant 0 : index
    %c16 = arith.constant 16 : index
    %c0_52 = arith.constant 0 : index
    %c0_53 = arith.constant 0 : index
    %48 = vector.load %arg2[%c0_51, %c16, %c0_52, %c0_53] : memref<1x20x2x128xf32, #tpu.memory_space<vmem>>, vector<1x1x2x128xf32>
    %49 = vector.shape_cast %48 : vector<1x1x2x128xf32> to vector<1x2x128xf32>
    %50 = arith.maximumf %47, %49 : vector<1x2x128xf32>
    %c0_54 = arith.constant 0 : index
    %c17 = arith.constant 17 : index
    %c0_55 = arith.constant 0 : index
    %c0_56 = arith.constant 0 : index
    %51 = vector.load %arg2[%c0_54, %c17, %c0_55, %c0_56] : memref<1x20x2x128xf32, #tpu.memory_space<vmem>>, vector<1x1x2x128xf32>
    %52 = vector.shape_cast %51 : vector<1x1x2x128xf32> to vector<1x2x128xf32>
    %53 = arith.maximumf %50, %52 : vector<1x2x128xf32>
    %c0_57 = arith.constant 0 : index
    %c18 = arith.constant 18 : index
    %c0_58 = arith.constant 0 : index
    %c0_59 = arith.constant 0 : index
    %54 = vector.load %arg2[%c0_57, %c18, %c0_58, %c0_59] : memref<1x20x2x128xf32, #tpu.memory_space<vmem>>, vector<1x1x2x128xf32>
    %55 = vector.shape_cast %54 : vector<1x1x2x128xf32> to vector<1x2x128xf32>
    %56 = arith.maximumf %53, %55 : vector<1x2x128xf32>
    %c0_60 = arith.constant 0 : index
    %c19 = arith.constant 19 : index
    %c0_61 = arith.constant 0 : index
    %c0_62 = arith.constant 0 : index
    %57 = vector.load %arg2[%c0_60, %c19, %c0_61, %c0_62] : memref<1x20x2x128xf32, #tpu.memory_space<vmem>>, vector<1x1x2x128xf32>
    %58 = vector.shape_cast %57 : vector<1x1x2x128xf32> to vector<1x2x128xf32>
    %59 = arith.maximumf %56, %58 : vector<1x2x128xf32>
    %cst = arith.constant 0.000000e+00 : f32
    %60 = vector.broadcast %cst : f32 to vector<1x2x128xf32>
    %cst_63 = arith.constant 0.000000e+00 : f32
    %61 = vector.broadcast %cst_63 : f32 to vector<1x2x128xf32>
    %c0_64 = arith.constant 0 : index
    %c0_65 = arith.constant 0 : index
    %c0_66 = arith.constant 0 : index
    %c0_67 = arith.constant 0 : index
    %62 = vector.load %arg2[%c0_64, %c0_65, %c0_66, %c0_67] : memref<1x20x2x128xf32, #tpu.memory_space<vmem>>, vector<1x1x2x128xf32>
    %63 = vector.shape_cast %62 : vector<1x1x2x128xf32> to vector<1x2x128xf32>
    %64 = arith.subf %63, %59 : vector<1x2x128xf32>
    %65 = math.exp %64 : vector<1x2x128xf32>
    %66 = arith.addf %60, %65 : vector<1x2x128xf32>
    %c0_i32 = arith.constant 0 : i32
    %67 = vector.broadcast %c0_i32 : i32 to vector<1x2x128xi32>
    %68 = arith.cmpi eq, %0, %67 : vector<1x2x128xi32>
    %69 = arith.select %68, %63, %61 : vector<1x2x128xi1>, vector<1x2x128xf32>
    %c0_68 = arith.constant 0 : index
    %c1_69 = arith.constant 1 : index
    %c0_70 = arith.constant 0 : index
    %c0_71 = arith.constant 0 : index
    %70 = vector.load %arg2[%c0_68, %c1_69, %c0_70, %c0_71] : memref<1x20x2x128xf32, #tpu.memory_space<vmem>>, vector<1x1x2x128xf32>
    %71 = vector.shape_cast %70 : vector<1x1x2x128xf32> to vector<1x2x128xf32>
    %72 = arith.subf %71, %59 : vector<1x2x128xf32>
    %73 = math.exp %72 : vector<1x2x128xf32>
    %74 = arith.addf %66, %73 : vector<1x2x128xf32>
    %c1_i32 = arith.constant 1 : i32
    %75 = vector.broadcast %c1_i32 : i32 to vector<1x2x128xi32>
    %76 = arith.cmpi eq, %0, %75 : vector<1x2x128xi32>
    %77 = arith.select %76, %71, %69 : vector<1x2x128xi1>, vector<1x2x128xf32>
    %c0_72 = arith.constant 0 : index
    %c2_73 = arith.constant 2 : index
    %c0_74 = arith.constant 0 : index
    %c0_75 = arith.constant 0 : index
    %78 = vector.load %arg2[%c0_72, %c2_73, %c0_74, %c0_75] : memref<1x20x2x128xf32, #tpu.memory_space<vmem>>, vector<1x1x2x128xf32>
    %79 = vector.shape_cast %78 : vector<1x1x2x128xf32> to vector<1x2x128xf32>
    %80 = arith.subf %79, %59 : vector<1x2x128xf32>
    %81 = math.exp %80 : vector<1x2x128xf32>
    %82 = arith.addf %74, %81 : vector<1x2x128xf32>
    %c2_i32 = arith.constant 2 : i32
    %83 = vector.broadcast %c2_i32 : i32 to vector<1x2x128xi32>
    %84 = arith.cmpi eq, %0, %83 : vector<1x2x128xi32>
    %85 = arith.select %84, %79, %77 : vector<1x2x128xi1>, vector<1x2x128xf32>
    %c0_76 = arith.constant 0 : index
    %c3_77 = arith.constant 3 : index
    %c0_78 = arith.constant 0 : index
    %c0_79 = arith.constant 0 : index
    %86 = vector.load %arg2[%c0_76, %c3_77, %c0_78, %c0_79] : memref<1x20x2x128xf32, #tpu.memory_space<vmem>>, vector<1x1x2x128xf32>
    %87 = vector.shape_cast %86 : vector<1x1x2x128xf32> to vector<1x2x128xf32>
    %88 = arith.subf %87, %59 : vector<1x2x128xf32>
    %89 = math.exp %88 : vector<1x2x128xf32>
    %90 = arith.addf %82, %89 : vector<1x2x128xf32>
    %c3_i32 = arith.constant 3 : i32
    %91 = vector.broadcast %c3_i32 : i32 to vector<1x2x128xi32>
    %92 = arith.cmpi eq, %0, %91 : vector<1x2x128xi32>
    %93 = arith.select %92, %87, %85 : vector<1x2x128xi1>, vector<1x2x128xf32>
    %c0_80 = arith.constant 0 : index
    %c4_81 = arith.constant 4 : index
    %c0_82 = arith.constant 0 : index
    %c0_83 = arith.constant 0 : index
    %94 = vector.load %arg2[%c0_80, %c4_81, %c0_82, %c0_83] : memref<1x20x2x128xf32, #tpu.memory_space<vmem>>, vector<1x1x2x128xf32>
    %95 = vector.shape_cast %94 : vector<1x1x2x128xf32> to vector<1x2x128xf32>
    %96 = arith.subf %95, %59 : vector<1x2x128xf32>
    %97 = math.exp %96 : vector<1x2x128xf32>
    %98 = arith.addf %90, %97 : vector<1x2x128xf32>
    %c4_i32 = arith.constant 4 : i32
    %99 = vector.broadcast %c4_i32 : i32 to vector<1x2x128xi32>
    %100 = arith.cmpi eq, %0, %99 : vector<1x2x128xi32>
    %101 = arith.select %100, %95, %93 : vector<1x2x128xi1>, vector<1x2x128xf32>
    %c0_84 = arith.constant 0 : index
    %c5_85 = arith.constant 5 : index
    %c0_86 = arith.constant 0 : index
    %c0_87 = arith.constant 0 : index
    %102 = vector.load %arg2[%c0_84, %c5_85, %c0_86, %c0_87] : memref<1x20x2x128xf32, #tpu.memory_space<vmem>>, vector<1x1x2x128xf32>
    %103 = vector.shape_cast %102 : vector<1x1x2x128xf32> to vector<1x2x128xf32>
    %104 = arith.subf %103, %59 : vector<1x2x128xf32>
    %105 = math.exp %104 : vector<1x2x128xf32>
    %106 = arith.addf %98, %105 : vector<1x2x128xf32>
    %c5_i32 = arith.constant 5 : i32
    %107 = vector.broadcast %c5_i32 : i32 to vector<1x2x128xi32>
    %108 = arith.cmpi eq, %0, %107 : vector<1x2x128xi32>
    %109 = arith.select %108, %103, %101 : vector<1x2x128xi1>, vector<1x2x128xf32>
    %c0_88 = arith.constant 0 : index
    %c6_89 = arith.constant 6 : index
    %c0_90 = arith.constant 0 : index
    %c0_91 = arith.constant 0 : index
    %110 = vector.load %arg2[%c0_88, %c6_89, %c0_90, %c0_91] : memref<1x20x2x128xf32, #tpu.memory_space<vmem>>, vector<1x1x2x128xf32>
    %111 = vector.shape_cast %110 : vector<1x1x2x128xf32> to vector<1x2x128xf32>
    %112 = arith.subf %111, %59 : vector<1x2x128xf32>
    %113 = math.exp %112 : vector<1x2x128xf32>
    %114 = arith.addf %106, %113 : vector<1x2x128xf32>
    %c6_i32 = arith.constant 6 : i32
    %115 = vector.broadcast %c6_i32 : i32 to vector<1x2x128xi32>
    %116 = arith.cmpi eq, %0, %115 : vector<1x2x128xi32>
    %117 = arith.select %116, %111, %109 : vector<1x2x128xi1>, vector<1x2x128xf32>
    %c0_92 = arith.constant 0 : index
    %c7_93 = arith.constant 7 : index
    %c0_94 = arith.constant 0 : index
    %c0_95 = arith.constant 0 : index
    %118 = vector.load %arg2[%c0_92, %c7_93, %c0_94, %c0_95] : memref<1x20x2x128xf32, #tpu.memory_space<vmem>>, vector<1x1x2x128xf32>
    %119 = vector.shape_cast %118 : vector<1x1x2x128xf32> to vector<1x2x128xf32>
    %120 = arith.subf %119, %59 : vector<1x2x128xf32>
    %121 = math.exp %120 : vector<1x2x128xf32>
    %122 = arith.addf %114, %121 : vector<1x2x128xf32>
    %c7_i32 = arith.constant 7 : i32
    %123 = vector.broadcast %c7_i32 : i32 to vector<1x2x128xi32>
    %124 = arith.cmpi eq, %0, %123 : vector<1x2x128xi32>
    %125 = arith.select %124, %119, %117 : vector<1x2x128xi1>, vector<1x2x128xf32>
    %c0_96 = arith.constant 0 : index
    %c8_97 = arith.constant 8 : index
    %c0_98 = arith.constant 0 : index
    %c0_99 = arith.constant 0 : index
    %126 = vector.load %arg2[%c0_96, %c8_97, %c0_98, %c0_99] : memref<1x20x2x128xf32, #tpu.memory_space<vmem>>, vector<1x1x2x128xf32>
    %127 = vector.shape_cast %126 : vector<1x1x2x128xf32> to vector<1x2x128xf32>
    %128 = arith.subf %127, %59 : vector<1x2x128xf32>
    %129 = math.exp %128 : vector<1x2x128xf32>
    %130 = arith.addf %122, %129 : vector<1x2x128xf32>
    %c8_i32 = arith.constant 8 : i32
    %131 = vector.broadcast %c8_i32 : i32 to vector<1x2x128xi32>
    %132 = arith.cmpi eq, %0, %131 : vector<1x2x128xi32>
    %133 = arith.select %132, %127, %125 : vector<1x2x128xi1>, vector<1x2x128xf32>
    %c0_100 = arith.constant 0 : index
    %c9_101 = arith.constant 9 : index
    %c0_102 = arith.constant 0 : index
    %c0_103 = arith.constant 0 : index
    %134 = vector.load %arg2[%c0_100, %c9_101, %c0_102, %c0_103] : memref<1x20x2x128xf32, #tpu.memory_space<vmem>>, vector<1x1x2x128xf32>
    %135 = vector.shape_cast %134 : vector<1x1x2x128xf32> to vector<1x2x128xf32>
    %136 = arith.subf %135, %59 : vector<1x2x128xf32>
    %137 = math.exp %136 : vector<1x2x128xf32>
    %138 = arith.addf %130, %137 : vector<1x2x128xf32>
    %c9_i32 = arith.constant 9 : i32
    %139 = vector.broadcast %c9_i32 : i32 to vector<1x2x128xi32>
    %140 = arith.cmpi eq, %0, %139 : vector<1x2x128xi32>
    %141 = arith.select %140, %135, %133 : vector<1x2x128xi1>, vector<1x2x128xf32>
    %c0_104 = arith.constant 0 : index
    %c10_105 = arith.constant 10 : index
    %c0_106 = arith.constant 0 : index
    %c0_107 = arith.constant 0 : index
    %142 = vector.load %arg2[%c0_104, %c10_105, %c0_106, %c0_107] : memref<1x20x2x128xf32, #tpu.memory_space<vmem>>, vector<1x1x2x128xf32>
    %143 = vector.shape_cast %142 : vector<1x1x2x128xf32> to vector<1x2x128xf32>
    %144 = arith.subf %143, %59 : vector<1x2x128xf32>
    %145 = math.exp %144 : vector<1x2x128xf32>
    %146 = arith.addf %138, %145 : vector<1x2x128xf32>
    %c10_i32 = arith.constant 10 : i32
    %147 = vector.broadcast %c10_i32 : i32 to vector<1x2x128xi32>
    %148 = arith.cmpi eq, %0, %147 : vector<1x2x128xi32>
    %149 = arith.select %148, %143, %141 : vector<1x2x128xi1>, vector<1x2x128xf32>
    %c0_108 = arith.constant 0 : index
    %c11_109 = arith.constant 11 : index
    %c0_110 = arith.constant 0 : index
    %c0_111 = arith.constant 0 : index
    %150 = vector.load %arg2[%c0_108, %c11_109, %c0_110, %c0_111] : memref<1x20x2x128xf32, #tpu.memory_space<vmem>>, vector<1x1x2x128xf32>
    %151 = vector.shape_cast %150 : vector<1x1x2x128xf32> to vector<1x2x128xf32>
    %152 = arith.subf %151, %59 : vector<1x2x128xf32>
    %153 = math.exp %152 : vector<1x2x128xf32>
    %154 = arith.addf %146, %153 : vector<1x2x128xf32>
    %c11_i32 = arith.constant 11 : i32
    %155 = vector.broadcast %c11_i32 : i32 to vector<1x2x128xi32>
    %156 = arith.cmpi eq, %0, %155 : vector<1x2x128xi32>
    %157 = arith.select %156, %151, %149 : vector<1x2x128xi1>, vector<1x2x128xf32>
    %c0_112 = arith.constant 0 : index
    %c12_113 = arith.constant 12 : index
    %c0_114 = arith.constant 0 : index
    %c0_115 = arith.constant 0 : index
    %158 = vector.load %arg2[%c0_112, %c12_113, %c0_114, %c0_115] : memref<1x20x2x128xf32, #tpu.memory_space<vmem>>, vector<1x1x2x128xf32>
    %159 = vector.shape_cast %158 : vector<1x1x2x128xf32> to vector<1x2x128xf32>
    %160 = arith.subf %159, %59 : vector<1x2x128xf32>
    %161 = math.exp %160 : vector<1x2x128xf32>
    %162 = arith.addf %154, %161 : vector<1x2x128xf32>
    %c12_i32 = arith.constant 12 : i32
    %163 = vector.broadcast %c12_i32 : i32 to vector<1x2x128xi32>
    %164 = arith.cmpi eq, %0, %163 : vector<1x2x128xi32>
    %165 = arith.select %164, %159, %157 : vector<1x2x128xi1>, vector<1x2x128xf32>
    %c0_116 = arith.constant 0 : index
    %c13_117 = arith.constant 13 : index
    %c0_118 = arith.constant 0 : index
    %c0_119 = arith.constant 0 : index
    %166 = vector.load %arg2[%c0_116, %c13_117, %c0_118, %c0_119] : memref<1x20x2x128xf32, #tpu.memory_space<vmem>>, vector<1x1x2x128xf32>
    %167 = vector.shape_cast %166 : vector<1x1x2x128xf32> to vector<1x2x128xf32>
    %168 = arith.subf %167, %59 : vector<1x2x128xf32>
    %169 = math.exp %168 : vector<1x2x128xf32>
    %170 = arith.addf %162, %169 : vector<1x2x128xf32>
    %c13_i32 = arith.constant 13 : i32
    %171 = vector.broadcast %c13_i32 : i32 to vector<1x2x128xi32>
    %172 = arith.cmpi eq, %0, %171 : vector<1x2x128xi32>
    %173 = arith.select %172, %167, %165 : vector<1x2x128xi1>, vector<1x2x128xf32>
    %c0_120 = arith.constant 0 : index
    %c14_121 = arith.constant 14 : index
    %c0_122 = arith.constant 0 : index
    %c0_123 = arith.constant 0 : index
    %174 = vector.load %arg2[%c0_120, %c14_121, %c0_122, %c0_123] : memref<1x20x2x128xf32, #tpu.memory_space<vmem>>, vector<1x1x2x128xf32>
    %175 = vector.shape_cast %174 : vector<1x1x2x128xf32> to vector<1x2x128xf32>
    %176 = arith.subf %175, %59 : vector<1x2x128xf32>
    %177 = math.exp %176 : vector<1x2x128xf32>
    %178 = arith.addf %170, %177 : vector<1x2x128xf32>
    %c14_i32 = arith.constant 14 : i32
    %179 = vector.broadcast %c14_i32 : i32 to vector<1x2x128xi32>
    %180 = arith.cmpi eq, %0, %179 : vector<1x2x128xi32>
    %181 = arith.select %180, %175, %173 : vector<1x2x128xi1>, vector<1x2x128xf32>
    %c0_124 = arith.constant 0 : index
    %c15_125 = arith.constant 15 : index
    %c0_126 = arith.constant 0 : index
    %c0_127 = arith.constant 0 : index
    %182 = vector.load %arg2[%c0_124, %c15_125, %c0_126, %c0_127] : memref<1x20x2x128xf32, #tpu.memory_space<vmem>>, vector<1x1x2x128xf32>
    %183 = vector.shape_cast %182 : vector<1x1x2x128xf32> to vector<1x2x128xf32>
    %184 = arith.subf %183, %59 : vector<1x2x128xf32>
    %185 = math.exp %184 : vector<1x2x128xf32>
    %186 = arith.addf %178, %185 : vector<1x2x128xf32>
    %c15_i32 = arith.constant 15 : i32
    %187 = vector.broadcast %c15_i32 : i32 to vector<1x2x128xi32>
    %188 = arith.cmpi eq, %0, %187 : vector<1x2x128xi32>
    %189 = arith.select %188, %183, %181 : vector<1x2x128xi1>, vector<1x2x128xf32>
    %c0_128 = arith.constant 0 : index
    %c16_129 = arith.constant 16 : index
    %c0_130 = arith.constant 0 : index
    %c0_131 = arith.constant 0 : index
    %190 = vector.load %arg2[%c0_128, %c16_129, %c0_130, %c0_131] : memref<1x20x2x128xf32, #tpu.memory_space<vmem>>, vector<1x1x2x128xf32>
    %191 = vector.shape_cast %190 : vector<1x1x2x128xf32> to vector<1x2x128xf32>
    %192 = arith.subf %191, %59 : vector<1x2x128xf32>
    %193 = math.exp %192 : vector<1x2x128xf32>
    %194 = arith.addf %186, %193 : vector<1x2x128xf32>
    %c16_i32 = arith.constant 16 : i32
    %195 = vector.broadcast %c16_i32 : i32 to vector<1x2x128xi32>
    %196 = arith.cmpi eq, %0, %195 : vector<1x2x128xi32>
    %197 = arith.select %196, %191, %189 : vector<1x2x128xi1>, vector<1x2x128xf32>
    %c0_132 = arith.constant 0 : index
    %c17_133 = arith.constant 17 : index
    %c0_134 = arith.constant 0 : index
    %c0_135 = arith.constant 0 : index
    %198 = vector.load %arg2[%c0_132, %c17_133, %c0_134, %c0_135] : memref<1x20x2x128xf32, #tpu.memory_space<vmem>>, vector<1x1x2x128xf32>
    %199 = vector.shape_cast %198 : vector<1x1x2x128xf32> to vector<1x2x128xf32>
    %200 = arith.subf %199, %59 : vector<1x2x128xf32>
    %201 = math.exp %200 : vector<1x2x128xf32>
    %202 = arith.addf %194, %201 : vector<1x2x128xf32>
    %c17_i32 = arith.constant 17 : i32
    %203 = vector.broadcast %c17_i32 : i32 to vector<1x2x128xi32>
    %204 = arith.cmpi eq, %0, %203 : vector<1x2x128xi32>
    %205 = arith.select %204, %199, %197 : vector<1x2x128xi1>, vector<1x2x128xf32>
    %c0_136 = arith.constant 0 : index
    %c18_137 = arith.constant 18 : index
    %c0_138 = arith.constant 0 : index
    %c0_139 = arith.constant 0 : index
    %206 = vector.load %arg2[%c0_136, %c18_137, %c0_138, %c0_139] : memref<1x20x2x128xf32, #tpu.memory_space<vmem>>, vector<1x1x2x128xf32>
    %207 = vector.shape_cast %206 : vector<1x1x2x128xf32> to vector<1x2x128xf32>
    %208 = arith.subf %207, %59 : vector<1x2x128xf32>
    %209 = math.exp %208 : vector<1x2x128xf32>
    %210 = arith.addf %202, %209 : vector<1x2x128xf32>
    %c18_i32 = arith.constant 18 : i32
    %211 = vector.broadcast %c18_i32 : i32 to vector<1x2x128xi32>
    %212 = arith.cmpi eq, %0, %211 : vector<1x2x128xi32>
    %213 = arith.select %212, %207, %205 : vector<1x2x128xi1>, vector<1x2x128xf32>
    %c0_140 = arith.constant 0 : index
    %c19_141 = arith.constant 19 : index
    %c0_142 = arith.constant 0 : index
    %c0_143 = arith.constant 0 : index
    %214 = vector.load %arg2[%c0_140, %c19_141, %c0_142, %c0_143] : memref<1x20x2x128xf32, #tpu.memory_space<vmem>>, vector<1x1x2x128xf32>
    %215 = vector.shape_cast %214 : vector<1x1x2x128xf32> to vector<1x2x128xf32>
    %216 = arith.subf %215, %59 : vector<1x2x128xf32>
    %217 = math.exp %216 : vector<1x2x128xf32>
    %218 = arith.addf %210, %217 : vector<1x2x128xf32>
    %c19_i32 = arith.constant 19 : i32
    %219 = vector.broadcast %c19_i32 : i32 to vector<1x2x128xi32>
    %220 = arith.cmpi eq, %0, %219 : vector<1x2x128xi32>
    %221 = arith.select %220, %215, %213 : vector<1x2x128xi1>, vector<1x2x128xf32>
    %222 = arith.subf %221, %59 : vector<1x2x128xf32>
    %223 = math.log %218 : vector<1x2x128xf32>
    %224 = arith.subf %222, %223 : vector<1x2x128xf32>
    %225 = math.exp %224 : vector<1x2x128xf32>
    %cst_144 = arith.constant 1.000000e+00 : f32
    %226 = vector.broadcast %cst_144 : f32 to vector<1x2x128xf32>
    %227 = arith.subf %226, %225 : vector<1x2x128xf32>
    %228 = arith.mulf %227, %227 : vector<1x2x128xf32>
    %229 = arith.mulf %228, %228 : vector<1x2x128xf32>
    %230 = arith.mulf %229, %229 : vector<1x2x128xf32>
    %cst_145 = arith.constant 0.000000e+00 : f32
    %231 = vector.broadcast %cst_145 : f32 to vector<1x2x128xf32>
    %232 = arith.subf %231, %230 : vector<1x2x128xf32>
    %233 = arith.mulf %232, %224 : vector<1x2x128xf32>
    %cst_146 = arith.constant dense<0.000000e+00> : vector<128xf32>
    %234 = vector.multi_reduction <add>, %233, %cst_146 [0, 1] : vector<1x2x128xf32> to vector<128xf32>
    %235 = vector.shape_cast %234 : vector<128xf32> to vector<1x128xf32>
    %c0_147 = arith.constant 0 : index
    %c0_148 = arith.constant 0 : index
    %c0_149 = arith.constant 0 : index
    %236 = vector.load %arg5[%c0_147, %c0_148, %c0_149] : memref<1x1x128xf32, #tpu.memory_space<vmem>>, vector<1x1x128xf32>
    %237 = vector.shape_cast %236 : vector<1x1x128xf32> to vector<1x128xf32>
    %238 = vector.shape_cast %235 : vector<1x128xf32> to vector<1x1x128xf32>
    tpu.vector_store %arg5[%c0_147, %c0_148, %c0_149], %238 {strides = array<i32>} : memref<1x1x128xf32, #tpu.memory_space<vmem>>, vector<1x1x128xf32>,
    return
  }
  func.func @transform_0(%arg0: i32, %arg1: i32) -> (i32, i32, i32, i32) {
    %c0_i32 = arith.constant 0 : i32
    %c0_i32_0 = arith.constant 0 : i32
    %c0_i32_1 = arith.constant 0 : i32
    return %arg0, %c0_i32, %arg1, %c0_i32_0 : i32, i32, i32, i32
  }
  func.func @transform_1(%arg0: i32, %arg1: i32) -> (i32, i32, i32) {
    %c0_i32 = arith.constant 0 : i32
    %c0_i32_0 = arith.constant 0 : i32
    return %arg0, %arg1, %c0_i32 : i32, i32, i32
  }
  func.func @transform_2(%arg0: i32, %arg1: i32) -> i32 {
    %c0_i32 = arith.constant 0 : i32
    %c0_i32_0 = arith.constant 0 : i32
    return %c0_i32 : i32
  }
  func.func @transform_3(%arg0: i32, %arg1: i32) -> (i32, i32, i32) {
    %c0_i32 = arith.constant 0 : i32
    %c0_i32_0 = arith.constant 0 : i32
    return %arg0, %c0_i32, %arg1 : i32, i32, i32
  }
}

</mosaic_0001>

<bundles_post_ra>
// kernel: tpu_custom_call.1
= control target key start
LH: loop header
LB: loop body
LE: loop exit
PB: predicated region body
PF: predicated region fallthrough
CT: control target
= control target key end

     0   :  { %s1300_s0 = inlined_call_operand.hbm [shape: f32[2,20,2,128], index: 0, kind: input, shape index: {}]   ;;  %s1301_s1 = inlined_call_operand.hbm [shape: s32[2,2,128], index: 1, kind: input, shape index: {}]   ;;  %s1302_s2 = inlined_call_operand.vmem [shape: f32[20], index: 2, kind: input, shape index: {}]   ;;  %s1303_s3 = inlined_call_operand.hbm [shape: f32[2,1,128], index: 3, kind: output, shape index: {}]  }
   0x1   :  { %1306 = sst [smem:[#allocation16_spill]] %s1300_s0 }
   0x2   :  { %1307 = sst [smem:[#allocation17_spill]] %s1302_s2 }
   0x3   :  { %8 = vsyncpa [#allocation3], 0 }
   0x4   :  { %10 = vsyncpa [#allocation3 + $0x1], 0 }
   0x5   :  { %11 = vsyncpa [#allocation7], 0 }
   0x6   :  { %13 = vsyncpa [#allocation7 + $0x1], 0 }
   0x7   :  { %14 = vsyncpa [#allocation5], 0 }
   0x8   :  { %15 = vsyncpa [#allocation4], 0 }
   0x9   :  { %17 = vsyncpa [#allocation4 + $0x1], 0  ;;  %s933_s12 = smov 0   ;;  %s935_s13 = smov 0  }
   0xa   :  { %s937_s14 = smov 0   ;;  %s939_s15 = smov 0  }
   0xb   :  { %s941_s16 = smov 0   ;;  %s943_s17 = smov 0  }
   0xc LB: > { %s586_s18 = sadd.s32 4294967295, %s905_s17   ;;  %s587_s19 = sadd.s32 4294967294, %s905_s17   ;;  %s905_s17 = sphi %s943_s17, %s23_s17   ;;  %s901_s16 = sphi %s941_s16, %s1330_s16   ;;  %s897_s15 = sphi %s939_s15, %s1329_s15   ;;  %s893_s14 = sphi %s937_s14, %s1328_s14   ;;  %s889_s13 = sphi %s935_s13, %s1327_s13   ;;  %s885_s12 = sphi %s933_s12, %s1326_s12  }
   0xd   : > { %s44_s20 = sadd.s32 1, %s893_s14  ;;  %p51_p0 = scmp.ne.s32.totalorder %s893_s14, %s889_s13 }
   0xe   : > { %p52_p1 = scmp.eq.s32.totalorder %s905_s17, 0  ;;  %p57_p2 = scmp.ne.s32.totalorder %s889_s13, %s885_s12 }
   0xf   : > { %p971_p3 = scmp.eq.s32.totalorder %s586_s18, 0  ;;  %p132_p4 = scmp.eq.s32.totalorder %s586_s18, 1 }
  0x10   : > { %p975_p5 = por %p52_p1, %p51_p0  ;;  %p138_p6 = scmp.eq.s32.totalorder %s587_s19, 1 }
  0x11   : > { %p981_p7 = por %p971_p3, %p57_p2  ;;  %p985_p8 = por %p132_p4, %p51_p0 }
  0x12   : > { %p989_p9 = por %p138_p6, %p57_p2  ;;  %p588_p10 = scmp.ge.s32.totalorder %s905_s17, 1 }
  0x13   : > { %s1311_s24 = scalar_select %p985_p8, 1, 0 }
  0x14   : > { %s1312_s25 = scalar_select %p989_p9, 1, 0 }
  0x15   : > { %p145_p11 = scmp.lt.s32.totalorder %s905_s17, 3  ;;  %s1313_s2 = sld [smem:[#allocation17_spill]] }
  0x16   : > { %p648_p0 = scmp.lt.s32.totalorder %s905_s17, 2  ;;  %s35_s5 = sadd.s32 1, %s901_s16 }
  0x17   : > { %p998_p12 = pnand %p588_p10, %p145_p11  ;;  %p1019_p6 = scmp.ge.s32.totalorder %s35_s5, 2 }
  0x18   : > { %p1008_p2 = pnand %p648_p0, %p975_p5  ;;  %s1024_s7 = sand.u32 1, %s893_s14  }
  0x19   : > { %p632_p1 = pneg %p998_p12 }
  0x1b   : > { %s158_s28 = sshll.u32 %s1313_s2, 4  ;;  %p1014_p4 = pnand %p632_p1, %p971_p3  ;;  %s159_s28 = int_to_ptr.vmem [resolvable:$true] %s158_s28 }
  0x1c   : > { %s746_s8 = scalar_lea.vmem %s159_s28, 16  ;;  %p754_p13 = scmp.lt.s32.totalorder %s159_s28, %s159_s28 }
  0x1d   : > { %p747_p10 = scmp.ne.s32.totalorder %s159_s28, %s746_s8  ;;  %p748_p5 = pneg %p1014_p4 }
  0x1e   : > { %p755_p9 = scmp.lt.s32.totalorder %s746_s8, %s746_s8 }
  0x1f   : > { %p749_p11 = pnand %p748_p5, %p747_p10 }
  0x20   : > { %p756_p1 = por %p755_p9, %p754_p13 }
  0x21   : > { %p750_p0 = pneg %p749_p11 }
  0x23   : > { %p757_p8 = pnand %p756_p1, %p750_p0 }
  0x25   : > { %760 = shalt.err (!%p757_p8)
}
  0x26   : > { %s907_s9 = smov [#allocation8]   ;;  %s1332_s5 = smov (%p1019_p6, %s35_s5), 0 }
  0x27   : > { %635 = dma.vmem_to_smem (!%p1014_p4), %s159_s28, 16, %s907_s9, [#allocation5]  }
  0x28   : > { %1318 = sst [smem:[#allocation14_spill]] %s1332_s5  ;;  %s619_s10 = smul.u32 40, %s1024_s7 }
  0x29   : > { %s39_s11 = ssub.s32 %s901_s16, %s1332_s5  ;;  %s620_s18 = smul.u32 640, %s901_s16 }
  0x2a   : > { %p42_p8 = scmp.eq.s32.totalorder %s39_s11, 0  ;;  %s1319_s0 = sld [smem:[#allocation16_spill]] }
  0x2b   : > { %s173_s27 = scalar_lea.vmem [#allocation2], %s619_s10  ;;  %s170_s2 = scalar_lea.sflag [#allocation3], %s1024_s7 }
  0x2c   : > { %s181_s4 = sshll.u32 %s173_s27, 4  ;;  %p763_p9 = pneg %p1008_p2  ;;  %s182_s4 = int_to_ptr.vmem [resolvable:$true] %s181_s4 }
  0x2d   : > { %s1044_s8 = scalar_select %p42_p8, %s893_s14, %s44_s20  }
  0x2e   : > { %s774_s28 = scalar_lea.vmem %s182_s4, 640  ;;  %s908_s6 = smov [#allocation2]  }
  0x2f   : > { %1320 = sst [smem:[#allocation15_spill]] %s1044_s8  ;;  %p775_p13 = scmp.ne.s32.totalorder %s182_s4, %s774_s28 }
  0x30   : > { %s180_s26 = scalar_lea.hbm %s1319_s0, %s620_s18  ;;  %s779_s9 = sshll.u32 %s908_s6, 4  ;;  %s780_s9 = int_to_ptr.vmem [resolvable:$false] %s779_s9 }
  0x31   : > { %p777_p4 = pnand %p775_p13, %p763_p9  ;;  %s781_s11 = scalar_lea.vmem %s780_s9, 1280 }
  0x32   : > { %p782_p10 = scmp.lt.s32.totalorder %s182_s4, %s780_s9  ;;  %p783_p5 = scmp.lt.s32.totalorder %s781_s11, %s774_s28 }
  0x33   : > { %p778_p6 = pneg %p777_p4 }
  0x34   : > { %p784_p11 = por %p783_p5, %p782_p10 }
  0x36   : > { %p785_p0 = pnand %p784_p11, %p778_p6 }
  0x38   : > { %788 = shalt.err (!%p785_p0)
}
  0x39   : > { %s909_s20 = smov 32   ;;  %s910_s10 = smov 2  }
  0x3a   : > { %639 = dma.hbm_to_vmem [thread:$0]  (!%p1008_p2), %s180_s26, 640, %s182_s4, %s170_s2, %s909_s20, %s909_s20, %s910_s10  }
  0x3b   : > { %s592_s18 = sshll.u32 %s1024_s7, 1  ;;  %s593_s19 = sshll.u32 %s901_s16, 5 }
  0x3c   : > { %s201_s6 = scalar_lea.hbm %s1301_s1, %s593_s19  ;;  %s195_s9 = scalar_lea.vmem [#allocation6], %s592_s18 }
  0x3d   : > { %s203_s28 = sshll.u32 %s195_s9, 4  ;;  %s192_s11 = scalar_lea.sflag [#allocation7], %s1024_s7  ;;  %s204_s28 = int_to_ptr.vmem [resolvable:$true] %s203_s28 }
  0x3e   : > { %s802_s0 = scalar_lea.vmem %s204_s28, 32  ;;  %s911_s5 = smov [#allocation6]  }
  0x3f   : > { %p803_p1 = scmp.ne.s32.totalorder %s204_s28, %s802_s0  ;;  %s807_s8 = sshll.u32 %s911_s5, 4  ;;  %s808_s8 = int_to_ptr.vmem [resolvable:$false] %s807_s8 }
  0x40   : > { %s809_s2 = scalar_lea.vmem %s808_s8, 64  ;;  %p810_p4 = scmp.lt.s32.totalorder %s204_s28, %s808_s8 }
  0x41   : > { %p805_p8 = pnand %p803_p1, %p763_p9  ;;  %p811_p6 = scmp.lt.s32.totalorder %s809_s2, %s802_s0 }
  0x43   : > { %p806_p13 = pneg %p805_p8  ;;  %p812_p10 = por %p811_p6, %p810_p4 }
  0x45   : > { %p813_p5 = pnand %p812_p10, %p806_p13 }
  0x47   : > { %816 = shalt.err (!%p813_p5)
}
  0x48   : > { %642 = dma.hbm_to_vmem [thread:$0]  (!%p1008_p2), %s201_s6, 32, %s204_s28, %s192_s11  }
  0x49   : > { %212 = sbr.rel (%p998_p12) target bundleno = 254 (0xfe), region = 32  ;;  %s1068_s7 = sand.u32 (!%p998_p12), 1, %s889_s13  }
  0x4a   : > { %s621_s5 = smul.u32 (!%p998_p12), 40, %s1068_s7  ;;  %s215_s26 = scalar_lea.sflag (!%p998_p12), [#allocation3], %s1068_s7 }
  0x4c   : > { %s1072_s4 = scalar_lea.vmem (!%p998_p12), [#allocation2], %s621_s5 }
  0x4e   : > { %868 = dma.done.wait (%p981_p7), %s215_s26, 640  }
  0x4f   : > { %870 = vsyncadd (%p981_p7), %s215_s26, 4294966656  ;;  %s595_s0 = sshll.u32 %s1068_s7, 1  ;;  %s224_s29 = scalar_lea.sflag [#allocation7], %s1068_s7 }
  0x50   : > { %s227_s30 = scalar_lea.vmem [#allocation6], %s595_s0 }
  0x51   : > { %872 = dma.done.wait (%p981_p7), %s224_s29, 32  }
  0x52   : > { %874 = vsyncadd (%p981_p7), %s224_s29, 4294967264 }
  0x53   : > { %876 = dma.done.wait (%p971_p3), [#allocation5], 16  }
  0x54   : > { %878 = vsyncadd (%p971_p3), [#allocation5], 4294967280 }
  0x55   : > { %236 = sfence }
  0x56   : > { %v1089_v0 = vld [vmem:[%s1072_s4] sm:$0x3]  ;;  %v1092_v1 = vld [vmem:[%s1072_s4 + $0x2] sm:$0x3]  ;;  %v1095_v2 = vld [vmem:[%s1072_s4 + $0x4] sm:$0x3] }
  0x57   : > { %v263_v3 = vmax.f32 %v1089_v0, %v1092_v1  ;;  %v1100_v4 = vld [vmem:[%s1072_s4 + $0x6] sm:$0x3]  ;;  %v1102_v5 = vld [vmem:[%s227_s30] sm:$0x3]  ;;  %v1106_v7 = vld [vmem:[%s1072_s4 + $0x8] sm:$0x3] }
  0x58   : > { %v1110_v9 = vld [vmem:[%s1072_s4 + $0xa] sm:$0x3]  ;;  %vm322_vm0 = vcmp.eq.s32.totalorder %v1102_v5, 0  ;;  %vm328_vm1 = vcmp.eq.s32.totalorder %v1102_v5, 1  ;;  %vm334_vm2 = vcmp.eq.s32.totalorder %v1102_v5, 2  ;;  %vm340_vm3 = vcmp.eq.s32.totalorder %v1102_v5, 3 }
  0x59   : > { %v266_v6 = vmax.f32 %v263_v3, %v1095_v2  ;;  %v323_v11 = vsel %vm322_vm0, %v1089_v0, 0.0  ;;  %v1119_v12 = vld [vmem:[%s1072_s4 + $0xc] sm:$0x3]  ;;  %vm346_vm4 = vcmp.eq.s32.totalorder %v1102_v5, 4  ;;  %vm352_vm5 = vcmp.eq.s32.totalorder %v1102_v5, 5  ;;  %s616_s21 = sshll.u32 %s897_s15, 4 }
  0x5a   : > { %v329_v13 = vsel %vm328_vm1, %v1092_v1, %v323_v11  ;;  %v1127_v16 = vld [vmem:[%s1072_s4 + $0xe] sm:$0x3]  ;;  %vm358_vm6 = vcmp.eq.s32.totalorder %v1102_v5, 6  ;;  %vm364_vm7 = vcmp.eq.s32.totalorder %v1102_v5, 7  ;;  %v1135_v20 = vld [vmem:[%s1072_s4 + $0x10] sm:$0x3]  ;;  %s471_s18 = scalar_lea.hbm %s1303_s3, %s616_s21 }
  0x5b   : > { %v269_v8 = vmax.f32 %v266_v6, %v1100_v4  ;;  %v335_v15 = vsel %vm334_vm2, %v1095_v2, %v329_v13  ;;  %vm370_vm8 = vcmp.eq.s32.totalorder %v1102_v5, 8  ;;  %vm376_vm9 = vcmp.eq.s32.totalorder %v1102_v5, 9  ;;  %v1143_v24 = vld [vmem:[%s1072_s4 + $0x12] sm:$0x3]  ;;  %v1151_v28 = vld [vmem:[%s1072_s4 + $0x14] sm:$0x3] }
  0x5c   : > { %v341_v17 = vsel %vm340_vm3, %v1100_v4, %v335_v15  ;;  %vm382_vm10 = vcmp.eq.s32.totalorder %v1102_v5, 10  ;;  %vm388_vm11 = vcmp.eq.s32.totalorder %v1102_v5, 11  ;;  %vm394_vm12 = vcmp.eq.s32.totalorder %v1102_v5, 12  ;;  %v1157_v31 = vld [vmem:[%s1072_s4 + $0x16] sm:$0x3]  ;;  %s258_s23 = scalar_lea.vmem [#allocation9], %s1068_s7 }
  0x5d   : > { %v272_v10 = vmax.f32 %v269_v8, %v1106_v7  ;;  %v347_v19 = vsel %vm346_vm4, %v1106_v7, %v341_v17  ;;  %vm400_vm13 = vcmp.eq.s32.totalorder %v1102_v5, 13  ;;  %v1162_v33 = vld [vmem:[%s1072_s4 + $0x18] sm:$0x3]  ;;  %vm406_vm14 = vcmp.eq.s32.totalorder %v1102_v5, 14  ;;  %v1168_v36 = vld [vmem:[%s1072_s4 + $0x1a] sm:$0x3] }
  0x5e   : > { %v353_v21 = vsel %vm352_vm5, %v1110_v9, %v347_v19  ;;  %vm412_vm15 = vcmp.eq.s32.totalorder %v1102_v5, 15  ;;  %v1173_v38 = vld [vmem:[%s1072_s4 + $0x1c] sm:$0x3]  ;;  %vm418_vm0 = vcmp.eq.s32.totalorder %v1102_v5, 16  ;;  %v1179_v41 = vld [vmem:[%s1072_s4 + $0x1e] sm:$0x3] }
  0x5f   : > { %v275_v14 = vmax.f32 %v272_v10, %v1110_v9  ;;  %v359_v23 = vsel %vm358_vm6, %v1119_v12, %v353_v21  ;;  %vm424_vm1 = vcmp.eq.s32.totalorder %v1102_v5, 17  ;;  %v1184_v43 = vld [vmem:[%s1072_s4 + $0x20] sm:$0x3]  ;;  %vm430_vm2 = vcmp.eq.s32.totalorder %v1102_v5, 18  ;;  %v1190_v46 = vld [vmem:[%s1072_s4 + $0x22] sm:$0x3] }
  0x60   : > { %v365_v25 = vsel %vm364_vm7, %v1127_v16, %v359_v23  ;;  %vm436_vm3 = vcmp.eq.s32.totalorder %v1102_v5, 19  ;;  %v1195_v48 = vld [vmem:[%s1072_s4 + $0x24] sm:$0x3]  ;;  %v1200_v51 = vld [vmem:[%s1072_s4 + $0x26] sm:$0x3]  ;;  %vm450_vm4 = vcmask 1041408  }
  0x61   : > { %v278_v18 = vmax.f32 %v275_v14, %v1119_v12  ;;  %v371_v27 = vsel %vm370_vm8, %v1135_v20, %v365_v25  ;;  %s473_s8 = sshll.u32 %s258_s23, 4  ;;  %s460_s19 = scalar_lea.sflag [#allocation4], %s1068_s7  ;;  %s474_s8 = int_to_ptr.vmem [resolvable:$true] %s473_s8 }
  0x62   : > { %v377_v29 = vsel %vm376_vm9, %v1143_v24, %v371_v27  ;;  %s817_s22 = scalar_lea.vmem %s474_s8, 16  ;;  %p1321_p7 = scmp.ne.s32.totalorder %s1311_s24, 0 }
  0x63   : > { %v281_v22 = vmax.f32 %v278_v18, %v1127_v16  ;;  %v383_v32 = vsel %vm382_vm10, %v1151_v28, %v377_v29  ;;  %p818_p3 = scmp.ne.s32.totalorder %s474_s8, %s817_s22  ;;  %s912_s27 = smov [#allocation9]  }
  0x64   : > { %v389_v34 = vsel %vm388_vm11, %v1157_v31, %v383_v32  ;;  %s821_s6 = sshll.u32 %s912_s27, 4  ;;  %s822_s6 = int_to_ptr.vmem [resolvable:$false] %s821_s6 }
  0x65   : > { %v284_v26 = vmax.f32 %v281_v22, %v1135_v20  ;;  %v395_v37 = vsel %vm394_vm12, %v1162_v33, %v389_v34  ;;  %p819_p12 = pnand %p818_p3, %p1321_p7  ;;  %s823_s15 = scalar_lea.vmem %s822_s6, 32 }
  0x66   : > { %v401_v39 = vsel %vm400_vm13, %v1168_v36, %v395_v37  ;;  %p824_p9 = scmp.lt.s32.totalorder %s474_s8, %s822_s6  ;;  %p825_p11 = scmp.lt.s32.totalorder %s823_s15, %s817_s22 }
  0x67   : > { %v287_v30 = vmax.f32 %v284_v26, %v1143_v24  ;;  %v407_v42 = vsel %vm406_vm14, %v1173_v38, %v401_v39  ;;  %p820_p2 = pneg %p819_p12 }
  0x68   : > { %v413_v44 = vsel %vm412_vm15, %v1179_v41, %v407_v42  ;;  %p826_p0 = por %p825_p11, %p824_p9 }
  0x69   : > { %v290_v35 = vmax.f32 %v287_v30, %v1151_v28  ;;  %v419_v47 = vsel %vm418_vm0, %v1184_v43, %v413_v44 }
  0x6a   : > { %v425_v49 = vsel %vm424_vm1, %v1190_v46, %v419_v47  ;;  %p827_p1 = pnand %p826_p0, %p820_p2 }
  0x6b   : > { %v293_v40 = vmax.f32 %v290_v35, %v1157_v31  ;;  %v431_v52 = vsel %vm430_vm2, %v1195_v48, %v425_v49 }
  0x6c   : > { %v1204_v53 = vsel %vm436_vm3, %v1200_v51, %v431_v52 }
  0x6d   : > { %v296_v45 = vmax.f32 %v293_v40, %v1162_v33 }
  0x6f   : > { %v299_v50 = vmax.f32 %v296_v45, %v1168_v36 }
  0x71   : > { %v302_v54 = vmax.f32 %v299_v50, %v1173_v38 }
  0x73   : > { %v305_v55 = vmax.f32 %v302_v54, %v1179_v41 }
  0x75   : > { %v308_v56 = vmax.f32 %v305_v55, %v1184_v43 }
  0x77   : > { %v311_v57 = vmax.f32 %v308_v56, %v1190_v46 }
  0x79   : > { %v314_v58 = vmax.f32 %v311_v57, %v1195_v48 }
  0x7b   : > { %v1212_v59 = vmax.f32 %v314_v58, %v1200_v51 }
  0x7d   : > { %v318_v60 = vsub.f32 %v1089_v0, %v1212_v59  ;;  %v324_v61 = vsub.f32 %v1092_v1, %v1212_v59  ;;  %v330_v62 = vsub.f32 %v1095_v2, %v1212_v59  ;;  %v336_v63 = vsub.f32 %v1100_v4, %v1212_v59 }
  0x7e   : > { %v342_v3 = vsub.f32 %v1106_v7, %v1212_v59  ;;  %v348_v11 = vsub.f32 %v1110_v9, %v1212_v59  ;;  %v354_v1 = vsub.f32 %v1119_v12, %v1212_v59  ;;  %v360_v4 = vsub.f32 %v1127_v16, %v1212_v59 }
  0x7f   : > { %v319_v5 = vmul.f32 1.442695, %v318_v60  ;;  %v325_v6 = vmul.f32 1.442695, %v324_v61  ;;  %v331_v8 = vmul.f32 1.442695, %v330_v62  ;;  %v366_v13 = vsub.f32 %v1135_v20, %v1212_v59 }
  0x80   : > { %v337_v10 = vmul.f32 1.442695, %v336_v63  ;;  %v343_v0 = vmul.f32 1.442695, %v342_v3  ;;  %v349_v2 = vmul.f32 1.442695, %v348_v11  ;;  %v438_v9 = vsub.f32 %v1204_v53, %v1212_v59 }
  0x81   : > { %702 = vpow2.f32 %v319_v5  ;;  %v355_v7 = vmul.f32 1.442695, %v354_v1  ;;  %v361_v14 = vmul.f32 1.442695, %v360_v4  ;;  %v372_v15 = vsub.f32 %v1143_v24, %v1212_v59 }
  0x82   : > { %704 = vpow2.f32 %v325_v6  ;;  %v367_v12 = vmul.f32 1.442695, %v366_v13  ;;  %v378_v17 = vsub.f32 %v1151_v28, %v1212_v59  ;;  %v384_v18 = vsub.f32 %v1157_v31, %v1212_v59 }
  0x83   : > { %706 = vpow2.f32 %v331_v8  ;;  %v373_v16 = vmul.f32 1.442695, %v372_v15  ;;  %v390_v21 = vsub.f32 %v1162_v33, %v1212_v59  ;;  %v396_v26 = vsub.f32 %v1168_v36, %v1212_v59 }
  0x84   : > { %708 = vpow2.f32 %v337_v10  ;;  %v379_v20 = vmul.f32 1.442695, %v378_v17  ;;  %v385_v24 = vmul.f32 1.442695, %v384_v18  ;;  %v402_v30 = vsub.f32 %v1173_v38, %v1212_v59 }
  0x85   : > { %710 = vpow2.f32 %v343_v0  ;;  %v391_v29 = vmul.f32 1.442695, %v390_v21  ;;  %v397_v34 = vmul.f32 1.442695, %v396_v26  ;;  %v408_v33 = vsub.f32 %v1179_v41, %v1212_v59 }
  0x86   : > { %712 = vpow2.f32 %v349_v2  ;;  %v403_v39 = vmul.f32 1.442695, %v402_v30  ;;  %v414_v36 = vsub.f32 %v1184_v43, %v1212_v59  ;;  %v420_v38 = vsub.f32 %v1190_v46, %v1212_v59 }
  0x87   : > { %714 = vpow2.f32 %v355_v7  ;;  %v409_v44 = vmul.f32 1.442695, %v408_v33  ;;  %v426_v41 = vsub.f32 %v1195_v48, %v1212_v59  ;;  %v432_v43 = vsub.f32 %v1200_v51, %v1212_v59 }
  0x88   : > { %716 = vpow2.f32 %v361_v14  ;;  %v415_v49 = vmul.f32 1.442695, %v414_v36  ;;  %v421_v54 = vmul.f32 1.442695, %v420_v38 }
  0x89   : > { %718 = vpow2.f32 %v367_v12  ;;  %v427_v57 = vmul.f32 1.442695, %v426_v41  ;;  %v433_v60 = vmul.f32 1.442695, %v432_v43 }
  0x8a   : > { %720 = vpow2.f32 %v373_v16 }
  0x8b   : > { %722 = vpow2.f32 %v379_v20 }
  0x8c   : > { %724 = vpow2.f32 %v385_v24 }
  0x8d   : > { %726 = vpow2.f32 %v391_v29 }
  0x8e   : > { %v703_v19 = vpop.eup %702  ;;  %728 = vpow2.f32 %v397_v34 }
  0x8f   : > { %v705_v22 = vpop.eup %704  ;;  %730 = vpow2.f32 %v403_v39 }
  0x90   : > { %v707_v23 = vpop.eup %706  ;;  %v327_v25 = vadd.f32 %v705_v22, %v703_v19  ;;  %732 = vpow2.f32 %v409_v44 }
  0x91   : > { %v709_v27 = vpop.eup %708  ;;  %734 = vpow2.f32 %v415_v49 }
  0x92   : > { %v333_v28 = vadd.f32 %v707_v23, %v327_v25  ;;  %v711_v31 = vpop.eup %710  ;;  %736 = vpow2.f32 %v421_v54 }
  0x93   : > { %v713_v35 = vpop.eup %712  ;;  %738 = vpow2.f32 %v427_v57 }
  0x94   : > { %v339_v32 = vadd.f32 %v709_v27, %v333_v28  ;;  %v715_v40 = vpop.eup %714  ;;  %740 = vpow2.f32 %v433_v60 }
  0x95   : > { %v717_v45 = vpop.eup %716 }
  0x96   : > { %v345_v37 = vadd.f32 %v711_v31, %v339_v32  ;;  %v719_v50 = vpop.eup %718 }
  0x97   : > { %v721_v55 = vpop.eup %720 }
  0x98   : > { %v351_v42 = vadd.f32 %v713_v35, %v345_v37  ;;  %v723_v58 = vpop.eup %722 }
  0x99   : > { %v725_v61 = vpop.eup %724 }
  0x9a   : > { %v357_v47 = vadd.f32 %v715_v40, %v351_v42  ;;  %v727_v63 = vpop.eup %726 }
  0x9b   : > { %v729_v3 = vpop.eup %728 }
  0x9c   : > { %v363_v52 = vadd.f32 %v717_v45, %v357_v47  ;;  %v731_v6 = vpop.eup %730 }
  0x9d   : > { %v733_v10 = vpop.eup %732 }
  0x9e   : > { %v369_v56 = vadd.f32 %v719_v50, %v363_v52  ;;  %v735_v11 = vpop.eup %734 }
  0x9f   : > { %v737_v1 = vpop.eup %736 }
  0xa0   : > { %v375_v46 = vadd.f32 %v721_v55, %v369_v56  ;;  %v739_v4 = vpop.eup %738 }
  0xa1   : > { %v741_v13 = vpop.eup %740 }
  0xa2   : > { %v381_v62 = vadd.f32 %v723_v58, %v375_v46 }
  0xa4   : > { %v387_v48 = vadd.f32 %v725_v61, %v381_v62 }
  0xa6   : > { %v393_v5 = vadd.f32 %v727_v63, %v387_v48 }
  0xa8   : > { %v399_v8 = vadd.f32 %v729_v3, %v393_v5 }
  0xaa   : > { %v405_v51 = vadd.f32 %v731_v6, %v399_v8 }
  0xac   : > { %v411_v0 = vadd.f32 %v733_v10, %v405_v51 }
  0xae   : > { %v417_v2 = vadd.f32 %v735_v11, %v411_v0 }
  0xb0   : > { %v423_v7 = vadd.f32 %v737_v1, %v417_v2 }
  0xb2   : > { %v429_v14 = vadd.f32 %v739_v4, %v423_v7 }
  0xb4   : > { %v435_v15 = vadd.f32 %v741_v13, %v429_v14 }
  0xb6   : > { %742 = vlog2.f32 %v435_v15 }
  0xc3   : > { %v743_v12 = vpop.eup %742 }
  0xc4   : > { %v440_v17 = vmul.f32 0.6931472, %v743_v12 }
  0xc6   : > { %v441_v16 = vsub.f32 %v438_v9, %v440_v17 }
  0xc8   : > { %v442_v18 = vmul.f32 1.442695, %v441_v16 }
  0xca   : > { %744 = vpow2.f32 %v442_v18 }
  0xd7   : > { %v745_v19 = vpop.eup %744 }
  0xd8   : > { %v444_v20 = vsub.f32 1.0, %v745_v19 }
  0xda   : > { %v445_v21 = vmul.f32 %v444_v20, %v444_v20 }
  0xdc   : > { %v446_v22 = vmul.f32 %v445_v21, %v445_v21 }
  0xde   : > { %v447_v23 = vmul.f32 %v446_v22, %v446_v22 }
  0xe0   : > { %v448_v25 = vsub.f32 0.0, %v447_v23 }
  0xe2   : > { %v449_v24 = vmul.f32 %v448_v25, %v441_v16 }
  0xe4   : > { %v451_v26 = vsel %vm450_vm4, %v449_v24, 0.0 }
  0xe5   : > { %v452_v27 = vrot.slane %v451_v26, 4 }
  0xe7   : > { %v453_v28 = vadd.f32 %v452_v27, %v451_v26 }
  0xe9   : > { %v454_v29 = vrot.slane %v453_v28, 2 }
  0xeb   : > { %v455_v53 = vadd.f32 %v454_v29, %v453_v28 }
  0xed   : > { %v456_v59 = vrot.slane %v455_v53, 1 }
  0xef   : > { %v457_v9 = vadd.f32 %v456_v59, %v455_v53 }
  0xf1   : > { %458 = vst [vmem:[%s258_s23] sm:$0x1] %v457_v9 }
  0xf2   : > { %830 = shalt.err (!%p827_p1)
}
  0xf3   : > { %s831_s9 = scalar_lea.hbm %s471_s18, 16  ;;  %s835_s2 = scalar_lea.hbm %s1303_s3, 32 }
  0xf4   : > { %p832_p8 = scmp.ne.s32.totalorder %s471_s18, %s831_s9  ;;  %p836_p6 = scmp.lt.s32.totalorder %s471_s18, %s1303_s3 }
  0xf5   : > { %p837_p10 = scmp.lt.s32.totalorder %s835_s2, %s831_s9 }
  0xf6   : > { %p833_p13 = pnand %p832_p8, %p1321_p7 }
  0xf7   : > { %p838_p5 = por %p837_p10, %p836_p6 }
  0xf8   : > { %p834_p4 = pneg %p833_p13 }
  0xfa   : > { %p839_p3 = pnand %p838_p5, %p834_p4 }
  0xfc   : > { %842 = shalt.err (!%p839_p3)
}
  0xfd   : > { %630 = dma.vmem_to_hbm [thread:$0]  (%p1321_p7), %s474_s8, 16, %s471_s18, %s460_s19  }
  0xfe PF: > { %s485_s26 = sand.u32 1, %s885_s12   ;;  %p1322_p12 = scmp.ne.s32.totalorder %s1312_s25, 0 }
  0xff   : > { %p1323_p2 = scmp.ge.s32.totalorder %s905_s17, 2  ;;  %s486_s4 = scalar_lea.sflag [#allocation4], %s485_s26 }
 0x101   : > { %p644_p9 = pnand %p1323_p2, %p1322_p12 }
 0x103   : > { %p645_p11 = pneg %p644_p9 }
 0x105   : > { %880 = dma.done.wait (%p645_p11), %s486_s4, 16  }
 0x106   : > { %882 = vsyncadd (%p645_p11), %s486_s4, 4294967280  ;;  %s23_s17 = sadd.s32 1, %s905_s17   ;;  %s1324_s0 = sld [smem:[#allocation15_spill]] }
 0x107   : > { %p20_p0 = scmp.ge.s32.totalorder %s23_s17, 4   ;;  %s1325_s24 = sld [smem:[#allocation14_spill]] }
 0x108   : > { %s1326_s12 = smov %s889_s13  ;;  %s1327_s13 = smov %s893_s14 }
 0x109   : > { %s1329_s15 = smov %s901_s16  ;;  %22 = sbr.rel (!%p20_p0) target bundleno = 12 (0xc), region = 114 }
 0x10c   : > { %s1328_s14 = smov %s1324_s0 }
 0x10d   : > { %s1330_s16 = smov %s1325_s24 }
 0x10e   :  { %490 = vsyncpa [#allocation3], 1 }
 0x10f   :  { %492 = vsyncpa [#allocation3 + $0x1], 1 }
 0x110   :  { %493 = vsyncpa [#allocation7], 1 }
 0x111   :  { %495 = vsyncpa [#allocation7 + $0x1], 1 }
 0x112   :  { %496 = vsyncpa [#allocation4], 1 }
 0x113   :  { %498 = vsyncpa [#allocation4 + $0x1], 1 }
 0x114   :  { %499 = vsyncpa [#allocation5], 1 }
 0x115   :  { %501 = vsyncpa [#allocation5 + $0x1], 1 }

</bundles_post_ra>
